<compile_context>
chip_gen: v7x
topology: tpu7x:2x2x1
jax: 0.10.0
libtpu: 0.0.40
codegen_flags: <defaults>
</compile_context>

<pallas_src>
import math
from functools import partial

import jax
import jax.numpy as jnp
from jax.experimental import pallas as pl
from jax.experimental.pallas import tpu as pltpu

_EPS = 1e-5


def _vmem_capacity_bytes():
    """Per-core VMEM capacity, with a conservative fallback (v7x = 64 MiB)."""
    try:
        return int(pltpu.get_tpu_info().vmem_capacity_bytes)
    except Exception:
        return 64 * 1024 * 1024


def _fold_groups(v, group_width, lane):
    """v: (1, lane) with lane == g * group_width (g a power of two).

    Returns w with w[0, l] = sum_j v[0, (l + j*group_width) % lane], i.e. the
    per-channel total (channel = lane % group_width) already replicated across
    all g group slots.  Pure lane rotations (XLU) + VPU adds, no reshapes.
    """
    off = group_width
    while off < lane:
        v = v + pltpu.roll(v, shift=off, axis=1)
        off *= 2
    return v


# ---------------------------------------------------------------------------
# Fast path: whole packed x resident in VMEM, single fused kernel.
# ---------------------------------------------------------------------------
def _fused_bn_kernel(x_ref, gamma_ref, beta_ref, o_ref, *, n, e, lane, eps):
    x = x_ref[...].astype(jnp.float32)                       # (rows, lane)
    inv_n = 1.0 / n
    s = _fold_groups(jnp.sum(x, axis=0, keepdims=True), e, lane)
    mean = s * inv_n                                          # per-lane channel mean
    d = x - mean                                              # centered (better precision)
    ss = _fold_groups(jnp.sum(d * d, axis=0, keepdims=True), e, lane)
    var = ss * inv_n                                          # biased variance
    inv_std = jax.lax.rsqrt(var + eps)
    scale = gamma_ref[...] * inv_std
    shift = beta_ref[...] - mean * scale
    o_ref[...] = (x * scale + shift).astype(o_ref.dtype)


# ---------------------------------------------------------------------------
# Two-pass path, phase 1: per-core partial sum / sum-of-squares.
#   stats block (16, lane): rows 0..7 = per-sublane partial sums,
#                           rows 8..15 = per-sublane partial sum-of-squares.
# ---------------------------------------------------------------------------
def _stats_kernel(x_ref, stats_ref, *, tile, lane, rows, tiles_per_core, mask_tail):
    c = pl.program_id(0)
    t = pl.program_id(1)

    @pl.when(t == 0)
    def _():
        stats_ref[...] = jnp.zeros_like(stats_ref)

    x = x_ref[...].astype(jnp.float32)

    if mask_tail:
        start = (c * tiles_per_core + t) * tile
        row_ids = start + jax.lax.broadcasted_iota(jnp.int32, (tile, lane), 0)
        x = jnp.where(row_ids < rows, x, 0.0)   # zero rows add nothing to stats

    if tile % 8 == 0:
        xr = x.reshape(tile // 8, 8, lane)       # leading-dim split: layout free
        stats_ref[0:8, :] += jnp.sum(xr, axis=0)          # VPU adds only
        stats_ref[8:16, :] += jnp.sum(xr * xr, axis=0)
    else:  # rare single-block case with rows not a multiple of 8
        stats_ref[0:1, :] += jnp.sum(x, axis=0, keepdims=True)
        stats_ref[8:9, :] += jnp.sum(x * x, axis=0, keepdims=True)


# ---------------------------------------------------------------------------
# Two-pass path, phase 2: y = x * scale + shift (scale/shift precomputed).
# ---------------------------------------------------------------------------
def _apply_kernel(x_ref, scale_ref, shift_ref, o_ref):
    x = x_ref[...].astype(jnp.float32)
    o_ref[...] = (x * scale_ref[...] + shift_ref[...]).astype(o_ref.dtype)


def batchnorm1d_pallas(x2d, gamma, beta, *, eps=_EPS, tile_rows=None,
                       force_two_pass=False):
    """Training-mode BatchNorm1d (biased variance) over the rows of x2d.

    x2d: (N, E), gamma/beta: (E,)  ->  (N, E), same dtype as x2d.
    """
    n, e = x2d.shape
    out_dtype = x2d.dtype

    # --- lane-dense packing (only when it needs no padding) ------------------
    g = 1
    if e < 128 and (128 % e == 0) and (n % (128 // e) == 0):
        g = 128 // e
    lane = g * e
    rows = n // g
    x_packed = x2d.reshape(rows, lane)           # contiguous-dims reshape (free)

    gamma32 = gamma.astype(jnp.float32).reshape(-1)
    beta32 = beta.astype(jnp.float32).reshape(-1)
    gamma_packed = jnp.tile(gamma32, g).reshape(1, lane)   # lane l -> channel l % E
    beta_packed = jnp.tile(beta32, g).reshape(1, lane)

    # --- generation-derived VMEM budget --------------------------------------
    vmem_cap = _vmem_capacity_bytes()
    vmem_limit = int(min(max(vmem_cap * 3 // 4, 32 * 1024 * 1024),
                         112 * 1024 * 1024))
    x_f32_bytes = rows * lane * 4

    # --- fast path: whole x resident in VMEM (1 read + 1 write of HBM) -------
    if (not force_two_pass) and (4 * x_f32_bytes + (4 << 20) <= vmem_limit):
        kernel = partial(_fused_bn_kernel, n=n, e=e, lane=lane, eps=eps)
        y_packed = pl.pallas_call(
            kernel,
            out_shape=jax.ShapeDtypeStruct((rows, lane), out_dtype),
            grid=(1,),
            in_specs=[
                pl.BlockSpec((rows, lane), lambda i: (0, 0)),
                pl.BlockSpec((1, lane), lambda i: (0, 0)),
                pl.BlockSpec((1, lane), lambda i: (0, 0)),
            ],
            out_specs=pl.BlockSpec((rows, lane), lambda i: (0, 0)),
            compiler_params=pltpu.CompilerParams(
                dimension_semantics=("arbitrary",),
                vmem_limit_bytes=vmem_limit,
            ),
        )(x_packed, gamma_packed, beta_packed)
        return y_packed.reshape(n, e)

    # --- two-pass path --------------------------------------------------------
    # row tile: ~4 MiB of f32, rounded to the dtype-native sublane multiple
    sub_mult = max(8, 32 // x2d.dtype.itemsize)  # 8 f32, 16 bf16, 32 int8/fp8
    if tile_rows is None:
        tile_rows = (4 * 1024 * 1024) // (lane * 4)
        tile_rows = min(tile_rows, 8192)
    tile = max(sub_mult, (tile_rows // sub_mult) * sub_mult)
    if rows <= tile:
        tile = rows                              # single block == full dim (legal)

    num_tiles = -(-rows // tile)
    num_cores = 2 if num_tiles >= 4 else 1       # shard stats reduction across TCs
    tiles_per_core = -(-num_tiles // num_cores)
    num_blocks = num_cores * tiles_per_core
    mask_tail = (num_blocks * tile != rows)

    # ---- phase 1: tiled reduction, per-core accumulator blocks ---------------
    stats_kernel = partial(_stats_kernel, tile=tile, lane=lane, rows=rows,
                           tiles_per_core=tiles_per_core, mask_tail=mask_tail)
    stats = pl.pallas_call(
        stats_kernel,
        out_shape=jax.ShapeDtypeStruct((num_cores * 16, lane), jnp.float32),
        grid=(num_cores, tiles_per_core),
        in_specs=[pl.BlockSpec((tile, lane),
                               lambda c, t: (c * tiles_per_core + t, 0))],
        out_specs=pl.BlockSpec((16, lane), lambda c, t: (c, 0)),
        compiler_params=pltpu.CompilerParams(
            dimension_semantics=("parallel", "arbitrary"),
            vmem_limit_bytes=vmem_limit,
        ),
    )(x_packed)

    # ---- tiny per-channel math (few KiB; negligible vs. the HBM passes) ------
    st = stats.reshape(num_cores, 2, 8, lane).sum(axis=(0, 2))   # (2, lane)
    ch = st.reshape(2, g, e).sum(axis=1)                         # (2, E)
    mean = ch[0] / n
    var = jnp.maximum(ch[1] / n - mean * mean, 0.0)              # biased variance
    inv_std = jax.lax.rsqrt(var + eps)
    scale = gamma32 * inv_std
    shift = beta32 - mean * scale
    scale_packed = jnp.tile(scale, g).reshape(1, lane)
    shift_packed = jnp.tile(shift, g).reshape(1, lane)

    # ---- phase 2: y = x * scale + shift, row-parallel, fully pipelined -------
    y_packed = pl.pallas_call(
        _apply_kernel,
        out_shape=jax.ShapeDtypeStruct((rows, lane), out_dtype),
        grid=(num_tiles,),
        in_specs=[
            pl.BlockSpec((tile, lane), lambda i: (i, 0)),
            pl.BlockSpec((1, lane), lambda i: (0, 0)),      # resident
            pl.BlockSpec((1, lane), lambda i: (0, 0)),      # resident
        ],
        out_specs=pl.BlockSpec((tile, lane), lambda i: (i, 0)),
        compiler_params=pltpu.CompilerParams(
            dimension_semantics=("parallel",),
            vmem_limit_bytes=vmem_limit,
        ),
    )(x_packed, scale_packed, shift_packed)

    return y_packed.reshape(n, e)


class NormalizationPallas:
    """JAX/Pallas port of the PyTorch `Normalization` module (normalization='batch')."""

    def __init__(self, embed_dim, key):
        self.embed_dim = embed_dim
        # init_parameters(): uniform(-stdv, stdv), stdv = 1/sqrt(embed_dim)
        stdv = 1.0 / math.sqrt(embed_dim)
        kg, kb = jax.random.split(key)
        self.gamma = jax.random.uniform(
            kg, (embed_dim,), jnp.float32, minval=-stdv, maxval=stdv)
        self.beta = jax.random.uniform(
            kb, (embed_dim,), jnp.float32, minval=-stdv, maxval=stdv)

    def __call__(self, inputs):
        x, h, mask = inputs
        mask = mask.astype(jnp.bool_)
        b, s, e = x.shape
        assert e == self.embed_dim
        y2d = batchnorm1d_pallas(x.reshape(b * s, e), self.gamma, self.beta)
        return (y2d.reshape(b, s, e), h, mask)


def _reference_batchnorm(x, gamma, beta, eps=_EPS):
    b, s, e = x.shape
    x2d = x.reshape(b * s, e)
    mean = jnp.mean(x2d, axis=0, keepdims=True)
    var = jnp.mean((x2d - mean) ** 2, axis=0, keepdims=True)
    y = (x2d - mean) / jnp.sqrt(var + eps) * gamma + beta
    return y.reshape(b, s, e)


if __name__ == "__main__":
    key = jax.random.PRNGKey(0)
    k_x, k_h, k_m, k_p, k_x2, k_x3 = jax.random.split(key, 6)

    # small shape consistent with the module's usage: x (B, S, E)
    B, S, E = 2, 8, 32
    x = jax.random.normal(k_x, (B, S, E), jnp.float32)
    h = jax.random.normal(k_h, (B, E), jnp.float32)
    mask = (jax.random.uniform(k_m, (B, S)) > 0.5).astype(jnp.int32)

    module = NormalizationPallas(E, k_p)
    y, h_out, mask_out = module((x, h, mask))
    y = jax.block_until_ready(y)

    y_ref = _reference_batchnorm(x, module.gamma, module.beta)
    assert jnp.allclose(y, y_ref, atol=1e-4, rtol=1e-4), "mismatch (fast path)"
    assert mask_out.dtype == jnp.bool_
    assert h_out.shape == h.shape

    # exercise the two-pass path: multi-tile grid, 2-way core split, ragged tail
    N2 = 1000
    x2 = jax.random.normal(k_x2, (N2, E), jnp.float32) * 2.0 + 0.5
    y2 = batchnorm1d_pallas(x2, module.gamma, module.beta,
                            tile_rows=64, force_two_pass=True)
    y2 = jax.block_until_ready(y2)
    y2_ref = _reference_batchnorm(
        x2.reshape(1, N2, E), module.gamma, module.beta).reshape(N2, E)
    assert jnp.allclose(y2, y2_ref, atol=1e-4, rtol=1e-4), "mismatch (two-pass)"

    # exercise the unpacked fast path (N not divisible by the packing group)
    N3 = 37
    x3 = jax.random.normal(k_x3, (N3, E), jnp.float32) - 1.5
    y3 = batchnorm1d_pallas(x3, module.gamma, module.beta)
    y3 = jax.block_until_ready(y3)
    y3_ref = _reference_batchnorm(
        x3.reshape(1, N3, E), module.gamma, module.beta).reshape(N3, E)
    assert jnp.allclose(y3, y3_ref, atol=1e-4, rtol=1e-4), "mismatch (unpacked)"

    print("KERNEL_OK")
</pallas_src>

<mosaic_0001>
module attributes {stable_mosaic.version = 11 : i64} {
  func.func @_fused_bn_kernel(%arg0: i32, %arg1: memref<4x128xf32, #tpu.memory_space<vmem>>, %arg2: memref<1x128xf32, #tpu.memory_space<vmem>>, %arg3: memref<1x128xf32, #tpu.memory_space<vmem>>, %arg4: memref<4x128xf32, #tpu.memory_space<vmem>>) attributes {dimension_semantics = [#tpu.dimension_semantics<arbitrary>], iteration_bounds = array<i64: 1>, scalar_prefetch = 0 : i64, scratch_operands = 0 : i64, tpu.core_type = #tpu.core_type<tc>, window_params = [{pipeline_mode = #tpu.pipeline_mode<synchronous>, transform_indices = @transform_0, window_bounds = array<i64: 4, 128>}, {pipeline_mode = #tpu.pipeline_mode<synchronous>, transform_indices = @transform_1, window_bounds = array<i64: 1, 128>}, {pipeline_mode = #tpu.pipeline_mode<synchronous>, transform_indices = @transform_2, window_bounds = array<i64: 1, 128>}, {pipeline_mode = #tpu.pipeline_mode<synchronous>, transform_indices = @transform_3, window_bounds = array<i64: 4, 128>}]} {
    %c0 = arith.constant 0 : index
    %c0_0 = arith.constant 0 : index
    %0 = vector.load %arg1[%c0, %c0_0] : memref<4x128xf32, #tpu.memory_space<vmem>>, vector<4x128xf32>
    %cst = arith.constant dense<0.000000e+00> : vector<128xf32>
    %1 = vector.multi_reduction <add>, %0, %cst [0] : vector<4x128xf32> to vector<128xf32>
    %2 = vector.shape_cast %1 : vector<128xf32> to vector<1x128xf32>
    %c32_i32 = arith.constant 32 : i32
    %3 = tpu.dynamic_rotate %2 by %c32_i32 dim 1 : vector<1x128xf32>, i32 -> vector<1x128xf32>
    %4 = arith.addf %2, %3 : vector<1x128xf32>
    %c64_i32 = arith.constant 64 : i32
    %5 = tpu.dynamic_rotate %4 by %c64_i32 dim 1 : vector<1x128xf32>, i32 -> vector<1x128xf32>
    %6 = arith.addf %4, %5 : vector<1x128xf32>
    %cst_1 = arith.constant 6.250000e-02 : f32
    %7 = vector.broadcast %cst_1 : f32 to vector<1x128xf32>
    %8 = arith.mulf %6, %7 : vector<1x128xf32>
    %9 = vector.broadcast %8 : vector<1x128xf32> to vector<4x128xf32>
    %10 = arith.subf %0, %9 : vector<4x128xf32>
    %11 = arith.mulf %10, %10 : vector<4x128xf32>
    %cst_2 = arith.constant dense<0.000000e+00> : vector<128xf32>
    %12 = vector.multi_reduction <add>, %11, %cst_2 [0] : vector<4x128xf32> to vector<128xf32>
    %13 = vector.shape_cast %12 : vector<128xf32> to vector<1x128xf32>
    %c32_i32_3 = arith.constant 32 : i32
    %14 = tpu.dynamic_rotate %13 by %c32_i32_3 dim 1 : vector<1x128xf32>, i32 -> vector<1x128xf32>
    %15 = arith.addf %13, %14 : vector<1x128xf32>
    %c64_i32_4 = arith.constant 64 : i32
    %16 = tpu.dynamic_rotate %15 by %c64_i32_4 dim 1 : vector<1x128xf32>, i32 -> vector<1x128xf32>
    %17 = arith.addf %15, %16 : vector<1x128xf32>
    %cst_5 = arith.constant 6.250000e-02 : f32
    %18 = vector.broadcast %cst_5 : f32 to vector<1x128xf32>
    %19 = arith.mulf %17, %18 : vector<1x128xf32>
    %cst_6 = arith.constant 9.99999974E-6 : f32
    %20 = vector.broadcast %cst_6 : f32 to vector<1x128xf32>
    %21 = arith.addf %19, %20 : vector<1x128xf32>
    %22 = math.rsqrt %21 : vector<1x128xf32>
    %c0_7 = arith.constant 0 : index
    %c0_8 = arith.constant 0 : index
    %23 = vector.load %arg2[%c0_7, %c0_8] : memref<1x128xf32, #tpu.memory_space<vmem>>, vector<1x128xf32>
    %24 = arith.mulf %23, %22 : vector<1x128xf32>
    %c0_9 = arith.constant 0 : index
    %c0_10 = arith.constant 0 : index
    %25 = vector.load %arg3[%c0_9, %c0_10] : memref<1x128xf32, #tpu.memory_space<vmem>>, vector<1x128xf32>
    %26 = arith.mulf %8, %24 : vector<1x128xf32>
    %27 = arith.subf %25, %26 : vector<1x128xf32>
    %28 = vector.broadcast %24 : vector<1x128xf32> to vector<4x128xf32>
    %29 = arith.mulf %0, %28 : vector<4x128xf32>
    %30 = vector.broadcast %27 : vector<1x128xf32> to vector<4x128xf32>
    %31 = arith.addf %29, %30 : vector<4x128xf32>
    %c0_11 = arith.constant 0 : index
    %c0_12 = arith.constant 0 : index
    %32 = vector.load %arg4[%c0_11, %c0_12] : memref<4x128xf32, #tpu.memory_space<vmem>>, vector<4x128xf32>
    tpu.vector_store %arg4[%c0_11, %c0_12], %31 {strides = array<i32>} : memref<4x128xf32, #tpu.memory_space<vmem>>, vector<4x128xf32>,
    return
  }
  func.func @transform_0(%arg0: i32) -> (i32, i32) {
    %c0_i32 = arith.constant 0 : i32
    %c0_i32_0 = arith.constant 0 : i32
    %c0_i32_1 = arith.constant 0 : i32
    return %c0_i32, %c0_i32_0 : i32, i32
  }
  func.func @transform_1(%arg0: i32) -> (i32, i32) {
    %c0_i32 = arith.constant 0 : i32
    %c0_i32_0 = arith.constant 0 : i32
    %c0_i32_1 = arith.constant 0 : i32
    return %c0_i32, %c0_i32_0 : i32, i32
  }
  func.func @transform_2(%arg0: i32) -> (i32, i32) {
    %c0_i32 = arith.constant 0 : i32
    %c0_i32_0 = arith.constant 0 : i32
    %c0_i32_1 = arith.constant 0 : i32
    return %c0_i32, %c0_i32_0 : i32, i32
  }
  func.func @transform_3(%arg0: i32) -> (i32, i32) {
    %c0_i32 = arith.constant 0 : i32
    %c0_i32_0 = arith.constant 0 : i32
    %c0_i32_1 = arith.constant 0 : i32
    return %c0_i32, %c0_i32_0 : i32, i32
  }
}

</mosaic_0001>

<bundles_post_ra>
// kernel: tpu_custom_call.1
= control target key start
LH: loop header
LB: loop body
LE: loop exit
PB: predicated region body
PF: predicated region fallthrough
CT: control target
= control target key end

     0   :  { %8 = vsyncpa [#allocation3], 0  ;;  %s210_s0 = inlined_call_operand.hbm [shape: f32[4,128], index: 0, kind: input, shape index: {}]   ;;  %s211_s1 = inlined_call_operand.vmem [shape: f32[1,128], index: 1, kind: input, shape index: {}]   ;;  %s212_s2 = inlined_call_operand.vmem [shape: f32[1,128], index: 2, kind: input, shape index: {}]   ;;  %s213_s3 = inlined_call_operand.hbm [shape: f32[4,128], index: 3, kind: output, shape index: {}]  }
   0x1   :  { %9 = vsyncpa [#allocation4], 0  ;;  %s154_s12 = smov [#allocation2]   ;;  %s106_s16 = scalar_lea.hbm %s210_s0, 64 }
   0x2   :  { %s16_s13 = sshll.u32 %s154_s12, 4  ;;  %p107_p0 = scmp.ne.s32.totalorder %s210_s0, %s106_s16  ;;  %s17_s13 = int_to_ptr.vmem [resolvable:$true] %s16_s13 }
   0x3   :  { %p110_p1 = scmp.lt.u32.totalorder %s106_s16, %s210_s0 }
   0x5   :  { %p112_p2 = pnand %p110_p1, %p107_p0 }
   0x7   :  { %115 = shalt.err (!%p112_p2)
}
   0x8   :  { %s116_s21 = scalar_lea.vmem %s17_s13, 64  ;;  %p121_p4 = scmp.lt.s32.totalorder %s17_s13, %s17_s13 }
   0x9   :  { %p117_p3 = scmp.ne.s32.totalorder %s17_s13, %s116_s21  ;;  %p122_p5 = scmp.lt.s32.totalorder %s116_s21, %s116_s21 }
   0xb   :  { %p123_p6 = por %p122_p5, %p121_p4 }
   0xd   :  { %p124_p7 = pnand %p123_p6, %p117_p3 }
   0xf   :  { %127 = shalt.err (!%p124_p7)
}
  0x10   :  { %19 = dma.hbm_to_vmem [thread:$0]  %s210_s0, 64, %s17_s13, [#allocation3]  }
  0x11   :  { %150 = dma.done.wait [#allocation3], 64  }
  0x12   :  { %151 = vsyncadd [#allocation3], 4294967232  ;;  %vm28_vm0 = vcmask 1043456   ;;  %v27_v0 = vld [vmem:[#allocation2] sm:$0xf]  ;;  %s155_s24 = smov 32   ;;  %v43_v10 = vlaneseq }
  0x13   :  { %v29_v1 = vsel %vm28_vm0, %v27_v0, 0.0  ;;  %s156_s25 = smov 64   ;;  %v65_v32 = vld [vmem:[%s211_s1] sm:$0x1]  ;;  %s157_s29 = smov [#allocation5]  }
  0x14   :  { %v30_v2 = vrot.slane %v29_v1, 4  ;;  %v44_v11 = vshrl.u32 %v43_v10, 7  ;;  %v67_v35 = vld [vmem:[%s212_s2] sm:$0x1]  ;;  %s91_s30 = sshll.u32 %s157_s29, 4  ;;  %s92_s30 = int_to_ptr.vmem [resolvable:$true] %s91_s30 }
  0x15   :  { %s128_s4 = scalar_lea.vmem %s92_s30, 64  ;;  %p133_p9 = scmp.lt.s32.totalorder %s92_s30, %s92_s30 }
  0x16   :  { %v31_v3 = vadd.f32 %v30_v2, %v29_v1  ;;  %v45_v13 = vsub.s32 0, %v44_v11  ;;  %p129_p8 = scmp.ne.s32.totalorder %s92_s30, %s128_s4  ;;  %p134_p10 = scmp.lt.s32.totalorder %s128_s4, %s128_s4 }
  0x18   :  { %v32_v4 = vrot.slane %v31_v3, 2  ;;  %p135_p11 = por %p134_p10, %p133_p9 }
  0x1a   :  { %v33_v5 = vadd.f32 %v32_v4, %v31_v3  ;;  %p136_p12 = pnand %p135_p11, %p129_p8 }
  0x1c   :  { %v34_v6 = vrot.slane %v33_v5, 1 }
  0x1e   :  { %v35_v7 = vadd.f32 %v34_v6, %v33_v5 }
  0x20   :  { %36 = vrot.lane.b32.xlu0 %v35_v7, %s155_s24 }
  0x92   :  { %v37_v8 = vpop.permute.xlu0 %36 }
  0x93   :  { %v38_v9 = vadd.f32 %v37_v8, %v35_v7 }
  0x95   :  { %39 = vrot.lane.b32.xlu0 %v38_v9, %s156_s25 }
 0x107   :  { %v40_v12 = vpop.permute.xlu0 %39 }
 0x108   :  { %v41_v14 = vadd.f32 %v40_v12, %v38_v9 }
 0x10a   :  { %v42_v15 = vmul.f32 0.0625, %v41_v14 }
 0x10c   :  { %v46_v16 = vrot.slane %v42_v15, %v45_v13 }
 0x10e   :  { %v47_v17 = vsub.f32 %v27_v0, %v46_v16 }
 0x110   :  { %v48_v18 = vmul.f32 %v47_v17, %v47_v17 }
 0x112   :  { %v49_v19 = vsel %vm28_vm0, %v48_v18, 0.0 }
 0x113   :  { %v50_v20 = vrot.slane %v49_v19, 4 }
 0x115   :  { %v51_v21 = vadd.f32 %v50_v20, %v49_v19 }
 0x117   :  { %v52_v22 = vrot.slane %v51_v21, 2 }
 0x119   :  { %v53_v23 = vadd.f32 %v52_v22, %v51_v21 }
 0x11b   :  { %v54_v24 = vrot.slane %v53_v23, 1 }
 0x11d   :  { %v55_v25 = vadd.f32 %v54_v24, %v53_v23 }
 0x11f   :  { %56 = vrot.lane.b32.xlu1 %v55_v25, %s155_s24 }
 0x191   :  { %v57_v26 = vpop.permute.xlu1 %56 }
 0x192   :  { %v58_v27 = vadd.f32 %v57_v26, %v55_v25 }
 0x194   :  { %59 = vrot.lane.b32.xlu1 %v58_v27, %s156_s25 }
 0x206   :  { %v60_v28 = vpop.permute.xlu1 %59 }
 0x207   :  { %v61_v29 = vadd.f32 %v60_v28, %v58_v27 }
 0x209   :  { %v62_v30 = vmul.f32 0.0625, %v61_v29 }
 0x20b   :  { %v63_v31 = vadd.f32 1e-05, %v62_v30 }
 0x20d   :  { %104 = vrsqrt.f32 %v63_v31 }
 0x217   :  { %v105_v33 = vpop.eup %104 }
 0x218   :  { %v66_v34 = vmul.f32 %v105_v33, %v65_v32 }
 0x21a   :  { %v68_v36 = vmul.f32 %v66_v34, %v42_v15  ;;  %v74_v37 = vrot.slane %v66_v34, %v45_v13 }
 0x21c   :  { %v69_v38 = vsub.f32 %v67_v35, %v68_v36  ;;  %v76_v39 = vmul.f32 %v74_v37, %v27_v0 }
 0x21e   :  { %v81_v40 = vrot.slane %v69_v38, %v45_v13 }
 0x220   :  { %v83_v41 = vadd.f32 %v81_v40, %v76_v39 }
 0x222   :  { %84 = vst [vmem:[#allocation5] sm:$0xf] %v83_v41 }
 0x223   :  { %139 = shalt.err (!%p136_p12)
}
 0x224   :  { %s140_s2 = scalar_lea.hbm %s213_s3, 64 }
 0x225   :  { %p141_p13 = scmp.ne.s32.totalorder %s213_s3, %s140_s2  ;;  %p144_p0 = scmp.lt.u32.totalorder %s140_s2, %s213_s3 }
 0x227   :  { %p146_p1 = pnand %p144_p0, %p141_p13 }
 0x229   :  { %149 = shalt.err (!%p146_p1)
}
 0x22a   :  { %94 = dma.vmem_to_hbm [thread:$0]  %s92_s30, 64, %s213_s3, [#allocation4]  }
 0x22b   :  { %152 = dma.done.wait [#allocation4], 64  }
 0x22c   :  { %153 = vsyncadd [#allocation4], 4294967232 }
 0x22d   :  { %98 = vsyncpa [#allocation3], 1 }
 0x22e   :  { %99 = vsyncpa [#allocation4], 1 }

</bundles_post_ra>
